<compile_context>
chip_gen: v5e
topology: v5e:2x2
jax: 0.10.0
libtpu: 0.0.40
codegen_flags: <defaults>
</compile_context>

<pallas_src>
import jax
import jax.numpy as jnp
from jax.experimental import pallas as pl
from jax.experimental.pallas import tpu as pltpu


def e2e_kernel(xa_ref, xflat_ref, w1_ref, w2big_ref, out_ref):
    """Single-step kernel; whole problem resident in VMEM (~0.6 MiB at test shapes).

    xa_ref    : (N*d, C*d + 1)  rows (n, i), cols (c, w) + ones column (bias fold)
    xflat_ref : (N, C*d*d)      pure reshape of NCHW x; cols flat over (c, h, w)
    w1_ref    : (C*d + 1, d*P)  row-path weight pre-tiled over j; last row = (b1+b2) tiled
    w2big_ref : (C*d*d, d*P)    block-diagonal column-path weight
    out_ref   : (N, d, d*P)     out[n, i, j*P + p]
    """
    n_batch, d, dp = out_ref.shape

    # Row path (+ combined bias): already replicated over j and lane-dense.
    a_rep = jnp.dot(xa_ref[...], w1_ref[...],
                    preferred_element_type=jnp.float32)          # (N*d, d*P)

    # Column path: block-diagonal weight makes b lane-dense straight out of the MXU.
    b_dense = jnp.dot(xflat_ref[...], w2big_ref[...],
                      preferred_element_type=jnp.float32)        # (N, d*P)

    # Minor dim unchanged, second-minor stays a multiple of 8 -> free regroup.
    a3 = a_rep.reshape(n_batch, d, dp)
    out_ref[...] = (a3 + b_dense[:, None, :]).astype(out_ref.dtype)


def e2e_block(x, w1, b1, w2, b2, *, unpack_nchw=True):
    """x: (N, C, d, d) NCHW; w1: (P, C, 1, d); w2: (P, C, d, 1); b1, b2: (P,)."""
    N, C, d, d2 = x.shape
    assert d == d2, "E2EBlock expects square spatial dims (H == W == d)"
    P = w1.shape[0]
    dtype = x.dtype

    # ---- operand prep (weight prep is one-time / constant-foldable in a real model) ----
    # Row path operand: rows (n, i), cols (c, w); ones column folds the combined bias
    # into the MXU (K: C*d -> C*d+1, free — lanes pad to 128 anyway).
    xa = jnp.transpose(x, (0, 2, 1, 3)).reshape(N * d, C * d)
    xa = jnp.concatenate([xa, jnp.ones((N * d, 1), dtype)], axis=1)        # (N*d, C*d+1)

    # Column path operand: a pure reshape of x — no second transposed copy of x shipped.
    xflat = x.reshape(N, C * d * d)                                        # (N, C*d*d)

    # Pre-tiled row-path weight + appended combined-bias row.
    w1f = w1.reshape(P, C * d).T                                           # (C*d, P)
    w1wide = jnp.concatenate(
        [jnp.tile(w1f, (1, d)),
         jnp.tile((b1 + b2).astype(dtype).reshape(1, P), (1, d))],
        axis=0)                                                            # (C*d+1, d*P)

    # Block-diagonal column-path weight: W2big[(c,h,w), j*P+p] = (w == j) * w2[p, c, h].
    # ~512 KiB f32 at the test shapes; the extra zero-FLOPs are free (MXU is idle).
    w2t = w2[:, :, :, 0].astype(dtype)                                     # (P, C, d=h)
    w2big = jnp.einsum('pch,wj->chwjp', w2t, jnp.eye(d, dtype=dtype))
    w2big = w2big.reshape(C * d * d, d * P)                                # (C*d*d, d*P)

    vmem = pl.BlockSpec(memory_space=pltpu.MemorySpace.VMEM)
    out_flat = pl.pallas_call(
        e2e_kernel,
        out_shape=jax.ShapeDtypeStruct((N, d, d * P), dtype),
        in_specs=[vmem, vmem, vmem, vmem],
        out_specs=vmem,
        compiler_params=pltpu.CompilerParams(
            # Let XLA fuse the transpose / concat / tile / reshape producers into the
            # pallas_call operands instead of materializing them in HBM.
            allow_input_fusion=[True, True, True, True]),
    )(xa, xflat, w1wide, w2big)

    if not unpack_nchw:
        # Lane-dense packed layout: out_flat[n, i, j*P + p].  Preferred for a consumer
        # that can work in this layout (skips an output-sized HBM round-trip).
        return out_flat

    # NCHW unpack (n, i, j*P+p) -> (n, p, i, j) to match the PyTorch module exactly.
    return jnp.transpose(out_flat.reshape(N, d, d, P), (0, 3, 1, 2))


def e2e_block_ref(x, w1, b1, w2, b2):
    """Pure-JAX reference matching the PyTorch forward."""
    a = jnp.einsum("nciw,pcw->npi", x, w1[:, :, 0, :]) + b1[None, :, None]
    b = jnp.einsum("nchj,pch->npj", x, w2[:, :, :, 0]) + b2[None, :, None]
    return a[:, :, :, None] + b[:, :, None, :]


if __name__ == "__main__":
    # in_planes=4, planes=8, d=16, batch=2  ->  d*P = 128 (lane-dense output), N*d = 32.
    N, C, P, d = 2, 4, 8, 16

    key = jax.random.PRNGKey(0)
    kx, kw1, kb1, kw2, kb2 = jax.random.split(key, 5)

    x = jax.random.normal(kx, (N, C, d, d), dtype=jnp.float32)
    # Conv2d(in_planes, planes, (1, d)) -> weight (P, C, 1, d); (d, 1) -> (P, C, d, 1)
    fan1 = C * d
    w1 = jax.random.normal(kw1, (P, C, 1, d), dtype=jnp.float32) / jnp.sqrt(fan1)
    b1 = jax.random.normal(kb1, (P,), dtype=jnp.float32) * 0.1
    w2 = jax.random.normal(kw2, (P, C, d, 1), dtype=jnp.float32) / jnp.sqrt(fan1)
    b2 = jax.random.normal(kb2, (P,), dtype=jnp.float32) * 0.1

    out = jax.block_until_ready(jax.jit(e2e_block)(x, w1, b1, w2, b2))
    ref = jax.block_until_ready(e2e_block_ref(x, w1, b1, w2, b2))

    assert out.shape == (N, P, d, d), out.shape
    err = float(jnp.max(jnp.abs(out - ref)))
    assert jnp.allclose(out, ref, atol=1e-5, rtol=1e-5), err
    print("KERNEL_OK")
</pallas_src>

<mosaic_0001>
module attributes {stable_mosaic.version = 11 : i64} {
  func.func @e2e_kernel(%arg0: memref<32x65xf32, #tpu.memory_space<vmem>>, %arg1: memref<2x1024xf32, #tpu.memory_space<vmem>>, %arg2: memref<65x128xf32, #tpu.memory_space<vmem>>, %arg3: memref<1024x128xf32, #tpu.memory_space<vmem>>, %arg4: memref<2x16x128xf32, #tpu.memory_space<vmem>>) attributes {dimension_semantics = [], scalar_prefetch = 0 : i64, scratch_operands = 0 : i64, tpu.core_type = #tpu.core_type<tc>} {
    %c0 = arith.constant 0 : index
    %c0_0 = arith.constant 0 : index
    %0 = vector.load %arg0[%c0, %c0_0] : memref<32x65xf32, #tpu.memory_space<vmem>>, vector<32x65xf32>
    %c0_1 = arith.constant 0 : index
    %c0_2 = arith.constant 0 : index
    %1 = vector.load %arg2[%c0_1, %c0_2] : memref<65x128xf32, #tpu.memory_space<vmem>>, vector<65x128xf32>
    %cst = arith.constant dense<0.000000e+00> : vector<32x128xf32>
    %2 = tpu.matmul %0, %1, %cst {dimension_numbers = #tpu.dot_dimension_numbers<[1], [0], [0], [1], [0, 0, 1, 1], [], []>} : vector<32x65xf32>, vector<65x128xf32>, vector<32x128xf32> -> vector<32x128xf32>
    %c0_3 = arith.constant 0 : index
    %c0_4 = arith.constant 0 : index
    %3 = vector.load %arg1[%c0_3, %c0_4] : memref<2x1024xf32, #tpu.memory_space<vmem>>, vector<2x1024xf32>
    %c0_5 = arith.constant 0 : index
    %c0_6 = arith.constant 0 : index
    %4 = vector.load %arg3[%c0_5, %c0_6] : memref<1024x128xf32, #tpu.memory_space<vmem>>, vector<1024x128xf32>
    %cst_7 = arith.constant dense<0.000000e+00> : vector<2x128xf32>
    %5 = tpu.matmul %3, %4, %cst_7 {dimension_numbers = #tpu.dot_dimension_numbers<[1], [0], [0], [1], [0, 0, 1, 1], [], []>} : vector<2x1024xf32>, vector<1024x128xf32>, vector<2x128xf32> -> vector<2x128xf32>
    %6 = vector.shape_cast %2 : vector<32x128xf32> to vector<2x16x128xf32>
    %7 = vector.shape_cast %5 : vector<2x128xf32> to vector<2x1x128xf32>
    %8 = vector.broadcast %7 : vector<2x1x128xf32> to vector<2x16x128xf32>
    %9 = arith.addf %6, %8 : vector<2x16x128xf32>
    %c0_8 = arith.constant 0 : index
    %c0_9 = arith.constant 0 : index
    %c0_10 = arith.constant 0 : index
    %10 = vector.load %arg4[%c0_8, %c0_9, %c0_10] : memref<2x16x128xf32, #tpu.memory_space<vmem>>, vector<2x16x128xf32>
    tpu.vector_store %arg4[%c0_8, %c0_9, %c0_10], %9 {strides = array<i32>} : memref<2x16x128xf32, #tpu.memory_space<vmem>>, vector<2x16x128xf32>,
    return
  }
}

</mosaic_0001>

<bundles_post_ra>
// kernel: e2e_block.2
= control target key start
LH: loop header
LB: loop body
LE: loop exit
PB: predicated region body
PF: predicated region fallthrough
CT: control target
= control target key end

     0   :  { %s1159_s0 = inlined_call_operand.vmem [shape: f32[2,1024], index: 0, kind: input, shape index: {}]   ;;  %s1160_s1 = inlined_call_operand.vmem [shape: f32[1024,128], index: 1, kind: input, shape index: {}]   ;;  %s1161_s2 = inlined_call_operand.vmem [shape: f32[1,128], index: 2, kind: input, shape index: {}]   ;;  %s1162_s3 = inlined_call_operand.<no memory space> [shape: f32[], index: 3, kind: input, shape index: {}]   ;;  %s1163_s4 = inlined_call_operand.vmem [shape: f32[64,128], index: 4, kind: input, shape index: {}]   ;;  %s1164_s5 = inlined_call_operand.vmem [shape: f32[32,64], index: 5, kind: input, shape index: {}]   ;;  %s1165_s6 = inlined_call_operand.<no memory space> [shape: f32[], index: 6, kind: input, shape index: {}]   ;;  %s1166_s7 = inlined_call_operand.vmem [shape: f32[2,16,128], index: 7, kind: output, shape index: {}]  }
   0x1   :  { %v632_v0 = vstv %s1165_s6  ;;  %v637_v1 = vstv %s1162_s3 }
   0x2   :  { %v45_v2 = vlaneseq  ;;  %v642_v3 = vld [vmem:[%s1163_s4 + $0x38] sm:$0xff]  ;;  %v647_v4 = vld [vmem:[%s1163_s4 + $0x30] sm:$0xff]  ;;  %v657_v7 = vld [vmem:[%s1163_s4 + $0x28] sm:$0xff]  ;;  %vm209_vm1 = vcmask 1040384   ;;  %vm196_vm3 = vcmask 531456  }
   0x3   :  { %v164_v5 = vmax.f32 %v642_v3, %v637_v1  ;;  %v275_v6 = vld [vmem:[%s1160_s1 + $0xf8] sm:$0xff]  ;;  %v274_v8 = vld [vmem:[%s1160_s1 + $0xf0] sm:$0xff]  ;;  %v154_v10 = vmax.f32 %v647_v4, %v637_v1  ;;  %v671_v12 = vld [vmem:[%s1163_s4 + $0x20] sm:$0xff]  ;;  %v144_v14 = vmax.f32 %v657_v7, %v637_v1 }
   0x4   :  { %v171_v9 = vshrl.u32 %v45_v2, 7  ;;  %413 = vmatpush.msra.mxu2 %v275_v6  ;;  %v291_v11 = vld [vmem:[%s1160_s1 + $0x178] sm:$0xff]  ;;  %v273_v15 = vld [vmem:[%s1160_s1 + $0xe8] sm:$0xff]  ;;  %v290_v16 = vld [vmem:[%s1160_s1 + $0x170] sm:$0xff]  ;;  %v134_v20 = vmax.f32 %v671_v12, %v637_v1  ;;  %v840_v6 = vand.u32 127, %v45_v2 }
   0x5   :  { %v259_v13 = vld [vmem:[%s1160_s1 + $0x78] sm:$0xff]  ;;  %433 = vmatpush.msra.mxu3 %v291_v11  ;;  %v91_v18 = vld [vmem:[%s1161_s2] sm:$0x1]  ;;  %v258_v21 = vld [vmem:[%s1160_s1 + $0x70] sm:$0xff] }
   0x6   :  { %393 = vmatpush.msra.mxu1 %v259_v13  ;;  %v687_v17 = vld [vmem:[%s1163_s4 + $0x18] sm:$0xff]  ;;  %v172_v19 = vadd.s32 64, %v171_v9  ;;  %414 = vmatpush.msra.mxu2 %v274_v8  ;;  %v289_v22 = vld [vmem:[%s1160_s1 + $0x168] sm:$0xff]  ;;  %v272_v24 = vld [vmem:[%s1160_s1 + $0xe0] sm:$0xff]  ;;  %vm48_vm2 = vcmp.lt.s32.totalorder %v840_v6, 64 }
   0x7   :  { %434 = vmatpush.msra.mxu3 %v290_v16  ;;  %v124_v23 = vmax.f32 %v687_v17, %v637_v1  ;;  %v708_v25 = vld [vmem:[%s1163_s4 + $0x10] sm:$0xff]  ;;  %v257_v26 = vld [vmem:[%s1160_s1 + $0x68] sm:$0xff]  ;;  %v288_v28 = vld [vmem:[%s1160_s1 + $0x160] sm:$0xff] }
   0x8   :  { %394 = vmatpush.msra.mxu1 %v258_v21  ;;  %vm173_vm0 = vcmp.lt.s32.totalorder %v172_v19, 65  ;;  %415 = vmatpush.msra.mxu2 %v273_v15  ;;  %v114_v27 = vmax.f32 %v708_v25, %v637_v1  ;;  %v721_v29 = vld [vmem:[%s1163_s4 + $0x8] sm:$0xff]  ;;  %v256_v30 = vld [vmem:[%s1160_s1 + $0x60] sm:$0xff]  ;;  %v271_v32 = vld [vmem:[%s1160_s1 + $0xd8] sm:$0xff] }
   0x9   :  { %v174_v31 = vsel %vm173_vm0, %v91_v18, %v637_v1  ;;  %435 = vmatpush.msra.mxu3 %v289_v22  ;;  %v104_v33 = vmax.f32 %v721_v29, %v637_v1  ;;  %v735_v34 = vld [vmem:[%s1163_s4] sm:$0xff]  ;;  %v287_v36 = vld [vmem:[%s1160_s1 + $0x158] sm:$0xff]  ;;  %v270_v38 = vld [vmem:[%s1160_s1 + $0xd0] sm:$0xff] }
   0xa   :  { %395 = vmatpush.msra.mxu1 %v257_v26  ;;  %v177_v35 = vmax.f32 %v637_v1, %v174_v31  ;;  %416 = vmatpush.msra.mxu2 %v272_v24  ;;  %v255_v37 = vld [vmem:[%s1160_s1 + $0x58] sm:$0xff]  ;;  %v95_v39 = vmax.f32 %v735_v34, %v637_v1  ;;  %v286_v40 = vld [vmem:[%s1160_s1 + $0x150] sm:$0xff]  ;;  %v269_v42 = vld [vmem:[%s1160_s1 + $0xc8] sm:$0xff] }
   0xb   :  { %436 = vmatpush.msra.mxu3 %v288_v28  ;;  %v254_v41 = vld [vmem:[%s1160_s1 + $0x50] sm:$0xff]  ;;  %v285_v43 = vld [vmem:[%s1160_s1 + $0x148] sm:$0xff]  ;;  %v268_v45 = vld [vmem:[%s1160_s1 + $0xc0] sm:$0xff] }
   0xc   :  { %396 = vmatpush.msra.mxu1 %v256_v30  ;;  %182 = vst [vmem:[#allocation18 + $0x8] sm:$0xff] %v177_v35  ;;  %417 = vmatpush.msra.mxu2 %v271_v32  ;;  %v253_v44 = vld [vmem:[%s1160_s1 + $0x48] sm:$0xff]  ;;  %v284_v46 = vld [vmem:[%s1160_s1 + $0x140] sm:$0xff]  ;;  %v267_v48 = vld [vmem:[%s1160_s1 + $0xb8] sm:$0xff] }
   0xd   :  { %437 = vmatpush.msra.mxu3 %v287_v36  ;;  %v252_v47 = vld [vmem:[%s1160_s1 + $0x40] sm:$0xff]  ;;  %v283_v49 = vld [vmem:[%s1160_s1 + $0x138] sm:$0xff]  ;;  %v266_v52 = vld [vmem:[%s1160_s1 + $0xb0] sm:$0xff] }
   0xe   :  { %397 = vmatpush.msra.mxu1 %v255_v37  ;;  %418 = vmatpush.msra.mxu2 %v270_v38  ;;  %v251_v50 = vld [vmem:[%s1160_s1 + $0x38] sm:$0xff]  ;;  %v282_v53 = vld [vmem:[%s1160_s1 + $0x130] sm:$0xff]  ;;  %v265_v55 = vld [vmem:[%s1160_s1 + $0xa8] sm:$0xff] }
   0xf   :  { %438 = vmatpush.msra.mxu3 %v286_v40  ;;  %v250_v54 = vld [vmem:[%s1160_s1 + $0x30] sm:$0xff]  ;;  %v281_v56 = vld [vmem:[%s1160_s1 + $0x128] sm:$0xff]  ;;  %v264_v58 = vld [vmem:[%s1160_s1 + $0xa0] sm:$0xff] }
  0x10   :  { %398 = vmatpush.msra.mxu1 %v254_v41  ;;  %419 = vmatpush.msra.mxu2 %v269_v42  ;;  %v249_v57 = vld [vmem:[%s1160_s1 + $0x28] sm:$0xff]  ;;  %v280_v59 = vld [vmem:[%s1160_s1 + $0x120] sm:$0xff]  ;;  %v263_v61 = vld [vmem:[%s1160_s1 + $0x98] sm:$0xff] }
  0x11   :  { %439 = vmatpush.msra.mxu3 %v285_v43  ;;  %v248_v60 = vld [vmem:[%s1160_s1 + $0x20] sm:$0xff]  ;;  %v279_v62 = vld [vmem:[%s1160_s1 + $0x118] sm:$0xff]  ;;  %v262_v3 = vld [vmem:[%s1160_s1 + $0x90] sm:$0xff] }
  0x12   :  { %399 = vmatpush.msra.mxu1 %v253_v44  ;;  %420 = vmatpush.msra.mxu2 %v268_v45  ;;  %v247_v63 = vld [vmem:[%s1160_s1 + $0x18] sm:$0xff]  ;;  %v278_v4 = vld [vmem:[%s1160_s1 + $0x110] sm:$0xff]  ;;  %v261_v7 = vld [vmem:[%s1160_s1 + $0x88] sm:$0xff] }
  0x13   :  { %v195_v51 = vld [vmem:[#allocation18 + $0x8] sm:$0x1]  ;;  %440 = vmatpush.msra.mxu3 %v284_v46  ;;  %v277_v8 = vld [vmem:[%s1160_s1 + $0x108] sm:$0xff]  ;;  %v260_v9 = vld [vmem:[%s1160_s1 + $0x80] sm:$0xff] }
  0x14   :  { %400 = vmatpush.msra.mxu1 %v252_v47  ;;  %584 = vmatpush.msk.msra.mxu0 %vm209_vm1, %v195_v51  ;;  %v245_v2 = vld [vmem:[%s1160_s1 + $0x8] sm:$0xff]  ;;  %v44_v11 = vld [vmem:[%s1164_s5] sm:$0xff]  ;;  %v355_v13 = vld [vmem:[%s1160_s1 + $0x378] sm:$0xff] }
  0x15   :  { %421 = vmatpush.msra.mxu2 %v267_v48  ;;  %441 = vmatpush.msra.mxu3 %v283_v49  ;;  %v276_v12 = vld [vmem:[%s1160_s1 + $0x100] sm:$0xff]  ;;  %v338_v15 = vld [vmem:[%s1160_s1 + $0x2f0] sm:$0xff]  ;;  %v49_v16 = vsel %vm48_vm2, %v44_v11, %v632_v0  ;;  %v323_v19 = vld [vmem:[%s1160_s1 + $0x278] sm:$0xff] }
  0x16   :  { %401 = vmatpush.msra.mxu1 %v251_v50  ;;  %221 = vmatpush.msra.mxu0 %v164_v5  ;;  %v246_v5 = vld [vmem:[%s1160_s1 + $0x10] sm:$0xff]  ;;  %v244_v17 = vld [vmem:[%s1160_s1] sm:$0xff]  ;;  %v305_v21 = vld [vmem:[%s1160_s1 + $0x1e8] sm:$0xff] }
  0x17   :  { %422 = vmatpush.msra.mxu2 %v266_v52  ;;  %442 = vmatpush.msra.mxu3 %v282_v53  ;;  %v306_v18 = vld [vmem:[%s1160_s1 + $0x1f0] sm:$0xff]  ;;  %v353_v24 = vld [vmem:[%s1160_s1 + $0x368] sm:$0xff]  ;;  %v242_v25 = vld [vmem:[%s1159_s0] sm:$0xff] }
  0x18   :  { %402 = vmatpush.msra.mxu1 %v250_v54  ;;  %222 = vmatpush.msra.mxu0 %v154_v10  ;;  %v339_v10 = vld [vmem:[%s1160_s1 + $0x2f8] sm:$0xff]  ;;  %v354_v1 = vld [vmem:[%s1160_s1 + $0x370] sm:$0xff]  ;;  %v304_v26 = vld [vmem:[%s1160_s1 + $0x1e0] sm:$0xff]  ;;  %374 = vst [vmem:[#allocation1] ss:$4 sm:$0xff] %v242_v25 }
  0x19   :  { %423 = vmatpush.msra.mxu2 %v265_v55  ;;  %443 = vmatpush.msra.mxu3 %v281_v56  ;;  %v322_v22 = vld [vmem:[%s1160_s1 + $0x270] sm:$0xff]  ;;  %v574_v28 = vld [vmem:[%s1164_s5 + $0x8] sm:$0xff]  ;;  %v335_v29 = vld [vmem:[%s1160_s1 + $0x2d8] sm:$0xff] }
  0x1a   :  { %403 = vmatpush.msra.mxu1 %v249_v57  ;;  %223 = vmatpush.msra.mxu0 %v144_v14  ;;  %v307_v14 = vld [vmem:[%s1160_s1 + $0x1f8] sm:$0xff]  ;;  %v352_v30 = vld [vmem:[%s1160_s1 + $0x360] sm:$0xff]  ;;  %v334_v34 = vld [vmem:[%s1160_s1 + $0x2d0] sm:$0xff] }
  0x1b   :  { %424 = vmatpush.msra.mxu2 %v264_v58  ;;  %444 = vmatpush.msra.mxu3 %v280_v59  ;;  %v303_v31 = vld [vmem:[%s1160_s1 + $0x1d8] sm:$0xff]  ;;  %v320_v32 = vld [vmem:[%s1160_s1 + $0x260] sm:$0xff]  ;;  %v302_v35 = vld [vmem:[%s1160_s1 + $0x1d0] sm:$0xff] }
  0x1c   :  { %404 = vmatpush.msra.mxu1 %v248_v60  ;;  %224 = vmatpush.msra.mxu0 %v134_v20  ;;  %v337_v20 = vld [vmem:[%s1160_s1 + $0x2e8] sm:$0xff]  ;;  %v351_v36 = vld [vmem:[%s1160_s1 + $0x358] sm:$0xff]  ;;  %v350_v40 = vld [vmem:[%s1160_s1 + $0x350] sm:$0xff] }
  0x1d   :  { %425 = vmatpush.msra.mxu2 %v263_v61  ;;  %445 = vmatpush.msra.mxu3 %v279_v62  ;;  %v319_v37 = vld [vmem:[%s1160_s1 + $0x258] sm:$0xff]  ;;  %v333_v38 = vld [vmem:[%s1160_s1 + $0x2c8] sm:$0xff]  ;;  %v318_v41 = vld [vmem:[%s1160_s1 + $0x250] sm:$0xff] }
  0x1e   :  { %405 = vmatpush.msra.mxu1 %v247_v63  ;;  %225 = vmatpush.msra.mxu0 %v124_v23  ;;  %v336_v23 = vld [vmem:[%s1160_s1 + $0x2e0] sm:$0xff]  ;;  %v349_v44 = vld [vmem:[%s1160_s1 + $0x348] sm:$0xff]  ;;  %v575_v45 = vld [vmem:[%s1164_s5 + $0x10] sm:$0xff] }
  0x1f   :  { %426 = vmatpush.msra.mxu2 %v262_v3  ;;  %446 = vmatpush.msra.mxu3 %v278_v4  ;;  %v332_v42 = vld [vmem:[%s1160_s1 + $0x2c0] sm:$0xff]  ;;  %v317_v46 = vld [vmem:[%s1160_s1 + $0x248] sm:$0xff]  ;;  %v331_v47 = vld [vmem:[%s1160_s1 + $0x2b8] sm:$0xff]  ;;  %v70_v51 = vsel %vm48_vm2, %v575_v45, %v632_v0 }
  0x20   :  { %406 = vmatpush.msra.mxu1 %v246_v5  ;;  %226 = vmatpush.msra.mxu0 %v114_v27  ;;  %v321_v27 = vld [vmem:[%s1160_s1 + $0x268] sm:$0xff]  ;;  %v300_v43 = vld [vmem:[%s1160_s1 + $0x1c0] sm:$0xff]  ;;  %v299_v49 = vld [vmem:[%s1160_s1 + $0x1b8] sm:$0xff] }
  0x21   :  { %427 = vmatpush.msra.mxu2 %v261_v7  ;;  %447 = vmatpush.msra.mxu3 %v277_v8  ;;  %v243_v48 = vld [vmem:[%s1159_s0 + $0x8] sm:$0xff]  ;;  %v348_v50 = vld [vmem:[%s1160_s1 + $0x340] sm:$0xff]  ;;  %v298_v53 = vld [vmem:[%s1160_s1 + $0x1b0] sm:$0xff] }
  0x22   :  { %407 = vmatpush.msra.mxu1 %v245_v2  ;;  %227 = vmatpush.msra.mxu0 %v104_v33  ;;  %v59_v33 = vsel %vm48_vm2, %v574_v28, %v632_v0  ;;  %v316_v52 = vld [vmem:[%s1160_s1 + $0x240] sm:$0xff]  ;;  %376 = vst [vmem:[#allocation1 + $0x20] ss:$4 sm:$0xff] %v243_v48  ;;  %v330_v54 = vld [vmem:[%s1160_s1 + $0x2b0] sm:$0xff]  ;;  %v347_v55 = vld [vmem:[%s1160_s1 + $0x338] sm:$0xff] }
  0x23   :  { %428 = vmatpush.msra.mxu2 %v260_v9  ;;  %448 = vmatpush.msra.mxu3 %v276_v12  ;;  %v315_v56 = vld [vmem:[%s1160_s1 + $0x238] sm:$0xff]  ;;  %v297_v57 = vld [vmem:[%s1160_s1 + $0x1a8] sm:$0xff]  ;;  %v346_v59 = vld [vmem:[%s1160_s1 + $0x330] sm:$0xff] }
  0x24   :  { %228 = vmatpush.msra.mxu0 %v95_v39  ;;  %408 = vmatpush.msra.mxu1 %v244_v17  ;;  %v301_v39 = vld [vmem:[%s1160_s1 + $0x1c8] sm:$0xff]  ;;  %v314_v60 = vld [vmem:[%s1160_s1 + $0x230] sm:$0xff]  ;;  %v296_v61 = vld [vmem:[%s1160_s1 + $0x1a0] sm:$0xff] }
  0x25   :  { %493 = vmatpush.msrb.mxu2 %v339_v10  ;;  %513 = vmatpush.msrb.mxu3 %v355_v13  ;;  %v329_v58 = vld [vmem:[%s1160_s1 + $0x2a8] sm:$0xff]  ;;  %v328_v62 = vld [vmem:[%s1160_s1 + $0x2a0] sm:$0xff]  ;;  %v295_v4 = vld [vmem:[%s1160_s1 + $0x198] sm:$0xff] }
  0x26   :  { %453 = vmatpush.msrb.mxu0 %v307_v14  ;;  %473 = vmatpush.msrb.mxu1 %v323_v19  ;;  %v345_v63 = vld [vmem:[%s1160_s1 + $0x328] sm:$0xff]  ;;  %v576_v7 = vld [vmem:[%s1164_s5 + $0x18] sm:$0xff]  ;;  %v344_v2 = vld [vmem:[%s1160_s1 + $0x320] sm:$0xff] }
  0x27   :  { %494 = vmatpush.msrb.mxu2 %v338_v15  ;;  %585 = vmatmul.msk.f32.vlgmr.msra.gmra.mxu0 %vm196_vm3, %v49_v16  ;;  %v378_v3 = vld.sshfl [vmem:[#allocation1 + $0x8] sm:$0xff pattern:$0x73625140]  ;;  %v327_v8 = vld [vmem:[%s1160_s1 + $0x298] sm:$0xff]  ;;  %v294_v9 = vld [vmem:[%s1160_s1 + $0x190] sm:$0xff]  ;;  %v81_v11 = vsel %vm48_vm2, %v576_v7, %v632_v0 }
  0x28   :  { %454 = vmatpush.msrb.mxu0 %v306_v18  ;;  %514 = vmatpush.msrb.mxu3 %v354_v1  ;;  %v313_v5 = vld [vmem:[%s1160_s1 + $0x228] sm:$0xff]  ;;  %v379_v10 = vld.sshfl [vmem:[#allocation1 + $0x10] sm:$0xff pattern:$0x73625140]  ;;  %v312_v12 = vld [vmem:[%s1160_s1 + $0x220] sm:$0xff] }
  0x29   :  { %495 = vmatpush.msrb.mxu2 %v337_v20  ;;  %474 = vmatpush.msrb.mxu1 %v322_v22  ;;  %v293_v13 = vld [vmem:[%s1160_s1 + $0x188] sm:$0xff]  ;;  %v326_v14 = vld [vmem:[%s1160_s1 + $0x290] sm:$0xff]  ;;  %v343_v0 = vld [vmem:[%s1160_s1 + $0x318] sm:$0xff] }
  0x2a   :  { %455 = vmatpush.msrb.mxu0 %v305_v21  ;;  %515 = vmatpush.msrb.mxu3 %v353_v24  ;;  %v377_v6 = vld.sshfl [vmem:[#allocation1] sm:$0xff pattern:$0x73625140]  ;;  %v311_v16 = vld [vmem:[%s1160_s1 + $0x218] sm:$0xff]  ;;  %v325_v18 = vld [vmem:[%s1160_s1 + $0x288] sm:$0xff] }
  0x2b   :  { %496 = vmatpush.msrb.mxu2 %v336_v23  ;;  %475 = vmatpush.msrb.mxu1 %v321_v27  ;;  %v292_v15 = vld [vmem:[%s1160_s1 + $0x180] sm:$0xff]  ;;  %v371_v17 = vld [vmem:[%s1160_s1 + $0x3f8] sm:$0xff]  ;;  %v342_v19 = vld [vmem:[%s1160_s1 + $0x310] sm:$0xff] }
  0x2c   :  { %456 = vmatpush.msrb.mxu0 %v304_v26  ;;  %516 = vmatpush.msrb.mxu3 %v352_v30  ;;  %v310_v20 = vld [vmem:[%s1160_s1 + $0x210] sm:$0xff]  ;;  %v324_v21 = vld [vmem:[%s1160_s1 + $0x280] sm:$0xff]  ;;  %v341_v22 = vld [vmem:[%s1160_s1 + $0x308] sm:$0xff] }
  0x2d   :  { %497 = vmatpush.msrb.mxu2 %v335_v29  ;;  %476 = vmatpush.msrb.mxu1 %v320_v32  ;;  %v370_v1 = vld [vmem:[%s1160_s1 + $0x3f0] sm:$0xff]  ;;  %v382_v23 = vld.sshfl [vmem:[#allocation1 + $0x28] sm:$0xff pattern:$0x73625140]  ;;  %v340_v26 = vld [vmem:[%s1160_s1 + $0x300] sm:$0xff] }
  0x2e   :  { %457 = vmatpush.msrb.mxu0 %v303_v31  ;;  %517 = vmatpush.msrb.mxu3 %v351_v36  ;;  %v369_v24 = vld [vmem:[%s1160_s1 + $0x3e8] sm:$0xff]  ;;  %v380_v27 = vld.sshfl [vmem:[#allocation1 + $0x18] sm:$0xff pattern:$0x73625140]  ;;  %v368_v28 = vld [vmem:[%s1160_s1 + $0x3e0] sm:$0xff] }
  0x2f   :  { %586 = vmatmul.msk.f32.gmra.mxu0 %vm196_vm3, %v59_v33  ;;  %498 = vmatpush.msrb.mxu2 %v334_v34  ;;  %v309_v25 = vld [vmem:[%s1160_s1 + $0x208] sm:$0xff]  ;;  %v383_v29 = vld.sshfl [vmem:[#allocation1 + $0x30] sm:$0xff pattern:$0x73625140]  ;;  %v308_v30 = vld [vmem:[%s1160_s1 + $0x200] sm:$0xff] }
  0x30   :  { %458 = vmatpush.msrb.mxu0 %v302_v35  ;;  %477 = vmatpush.msrb.mxu1 %v319_v37  ;;  %v367_v31 = vld [vmem:[%s1160_s1 + $0x3d8] sm:$0xff]  ;;  %v381_v32 = vld.sshfl [vmem:[#allocation1 + $0x20] sm:$0xff pattern:$0x73625140]  ;;  %v366_v33 = vld [vmem:[%s1160_s1 + $0x3d0] sm:$0xff] }
  0x31   :  { %499 = vmatpush.msrb.mxu2 %v333_v38  ;;  %518 = vmatpush.msrb.mxu3 %v350_v40  ;;  %v365_v34 = vld [vmem:[%s1160_s1 + $0x3c8] sm:$0xff]  ;;  %v364_v35 = vld [vmem:[%s1160_s1 + $0x3c0] sm:$0xff]  ;;  %v363_v36 = vld [vmem:[%s1160_s1 + $0x3b8] sm:$0xff] }
  0x32   :  { %459 = vmatpush.msrb.mxu0 %v301_v39  ;;  %478 = vmatpush.msrb.mxu1 %v318_v41  ;;  %v362_v37 = vld [vmem:[%s1160_s1 + $0x3b0] sm:$0xff]  ;;  %v361_v38 = vld [vmem:[%s1160_s1 + $0x3a8] sm:$0xff]  ;;  %v360_v39 = vld [vmem:[%s1160_s1 + $0x3a0] sm:$0xff] }
  0x33   :  { %500 = vmatpush.msrb.mxu2 %v332_v42  ;;  %519 = vmatpush.msrb.mxu3 %v349_v44  ;;  %v359_v40 = vld [vmem:[%s1160_s1 + $0x398] sm:$0xff]  ;;  %v358_v41 = vld [vmem:[%s1160_s1 + $0x390] sm:$0xff]  ;;  %v357_v42 = vld [vmem:[%s1160_s1 + $0x388] sm:$0xff] }
  0x34   :  { %460 = vmatpush.msrb.mxu0 %v300_v43  ;;  %479 = vmatpush.msrb.mxu1 %v317_v46  ;;  %v356_v43 = vld [vmem:[%s1160_s1 + $0x380] sm:$0xff]  ;;  %v384_v44 = vld.sshfl [vmem:[#allocation1 + $0x38] sm:$0xff pattern:$0x73625140] }
  0x35   :  { %501 = vmatpush.msrb.mxu2 %v331_v47  ;;  %520 = vmatpush.msrb.mxu3 %v348_v50 }
  0x36   :  { %461 = vmatpush.msrb.mxu0 %v299_v49  ;;  %480 = vmatpush.msrb.mxu1 %v316_v52 }
  0x37   :  { %587 = vmatmul.msk.f32.gmra.mxu0 %vm196_vm3, %v70_v51  ;;  %502 = vmatpush.msrb.mxu2 %v330_v54 }
  0x38   :  { %462 = vmatpush.msrb.mxu0 %v298_v53  ;;  %521 = vmatpush.msrb.mxu3 %v347_v55 }
  0x39   :  { %481 = vmatpush.msrb.mxu1 %v315_v56  ;;  %503 = vmatpush.msrb.mxu2 %v329_v58 }
  0x3a   :  { %463 = vmatpush.msrb.mxu0 %v297_v57  ;;  %522 = vmatpush.msrb.mxu3 %v346_v59 }
  0x3b   :  { %482 = vmatpush.msrb.mxu1 %v314_v60  ;;  %504 = vmatpush.msrb.mxu2 %v328_v62 }
  0x3c   :  { %464 = vmatpush.msrb.mxu0 %v296_v61  ;;  %523 = vmatpush.msrb.mxu3 %v345_v63 }
  0x3d   :  { %429 = vmatmul.f32.vlgmr.msra.gmra.mxu2 %v378_v3  ;;  %483 = vmatpush.msrb.mxu1 %v313_v5 }
  0x3e   :  { %465 = vmatpush.msrb.mxu0 %v295_v4  ;;  %505 = vmatpush.msrb.mxu2 %v327_v8 }
  0x3f   :  { %524 = vmatpush.msrb.mxu3 %v344_v2  ;;  %588 = vmatmul.msk.f32.gmra.mxu0 %vm196_vm3, %v81_v11 }
  0x40   :  { %466 = vmatpush.msrb.mxu0 %v294_v9  ;;  %449 = vmatmul.f32.vlgmr.msra.gmra.mxu3 %v379_v10 }
  0x41   :  { %484 = vmatpush.msrb.mxu1 %v312_v12  ;;  %506 = vmatpush.msrb.mxu2 %v326_v14 }
  0x42   :  { %467 = vmatpush.msrb.mxu0 %v293_v13  ;;  %525 = vmatpush.msrb.mxu3 %v343_v0 }
  0x43   :  { %409 = vmatmul.f32.vlgmr.msra.gmra.mxu1 %v377_v6  ;;  %507 = vmatpush.msrb.mxu2 %v325_v18 }
  0x44   :  { %468 = vmatpush.msrb.mxu0 %v292_v15  ;;  %485 = vmatpush.msrb.mxu1 %v311_v16 }
  0x45   :  { %526 = vmatpush.msrb.mxu3 %v342_v19  ;;  %508 = vmatpush.msrb.mxu2 %v324_v21 }
  0x46   :  { %533 = vmatpush.msra.mxu0 %v371_v17  ;;  %486 = vmatpush.msrb.mxu1 %v310_v20 }
  0x47   :  { %527 = vmatpush.msrb.mxu3 %v341_v22  ;;  %509 = vmatmul.f32.vlgmr.msrb.gmra.mxu2 %v382_v23 }
  0x48   :  { %534 = vmatpush.msra.mxu0 %v370_v1  ;;  %487 = vmatpush.msrb.mxu1 %v309_v25 }
  0x49   :  { %528 = vmatpush.msrb.mxu3 %v340_v26  ;;  %469 = vmatmul.f32.vlgmr.msrb.gmra.mxu0 %v380_v27 }
  0x4a   :  { %535 = vmatpush.msra.mxu0 %v369_v24  ;;  %529 = vmatmul.f32.vlgmr.msrb.gmra.mxu3 %v383_v29 }
  0x4b   :  { %488 = vmatpush.msrb.mxu1 %v308_v30 }
  0x4c   :  { %536 = vmatpush.msra.mxu0 %v368_v28  ;;  %489 = vmatmul.f32.vlgmr.msrb.gmra.mxu1 %v381_v32 }
  0x4e   :  { %537 = vmatpush.msra.mxu0 %v367_v31 }
  0x50   :  { %538 = vmatpush.msra.mxu0 %v366_v33 }
  0x52   :  { %539 = vmatpush.msra.mxu0 %v365_v34 }
  0x54   :  { %540 = vmatpush.msra.mxu0 %v364_v35 }
  0x56   :  { %541 = vmatpush.msra.mxu0 %v363_v36 }
  0x58   :  { %542 = vmatpush.msra.mxu0 %v362_v37 }
  0x5a   :  { %543 = vmatpush.msra.mxu0 %v361_v38 }
  0x5c   :  { %544 = vmatpush.msra.mxu0 %v360_v39 }
  0x5e   :  { %545 = vmatpush.msra.mxu0 %v359_v40 }
  0x60   :  { %546 = vmatpush.msra.mxu0 %v358_v41 }
  0x62   :  { %547 = vmatpush.msra.mxu0 %v357_v42 }
  0x64   :  { %548 = vmatpush.msra.mxu0 %v356_v43 }
  0x65   :  { %549 = vmatmul.f32.vlgmr.msra.gmra.mxu0 %v384_v44 }
  0xa4   :  { %v230_v45 = vpop.f32.mrf.mxu0 }
  0xac   :  { %v233_v46 = vpop.f32.mrf.mxu0 }
  0xb4   :  { %v236_v47 = vpop.f32.mrf.mxu0 }
  0xbc   :  { %v239_v48 = vpop.f32.mrf.mxu0 }
  0xc0   :  { %v430_v49 = vpop.f32.mrf.mxu2  ;;  %v410_v50 = vpop.f32.mrf.mxu1 }
  0xc1   :  { %v431_v51 = vadd.f32 %v430_v49, %v410_v50 }
  0xc3   :  { %v450_v52 = vpop.f32.mrf.mxu3 }
  0xc4   :  { %v451_v53 = vadd.f32 %v450_v52, %v431_v51 }
  0xc6   :  { %v470_v54 = vpop.f32.mrf.mxu0 }
  0xc7   :  { %v471_v55 = vadd.f32 %v470_v54, %v451_v53 }
  0xc9   :  { %v490_v56 = vpop.f32.mrf.mxu1 }
  0xca   :  { %v491_v57 = vadd.f32 %v490_v56, %v471_v55  ;;  %v510_v58 = vpop.f32.mrf.mxu2 }
  0xcc   :  { %v511_v59 = vadd.f32 %v510_v58, %v491_v57 }
  0xcd   :  { %v530_v60 = vpop.f32.mrf.mxu3 }
  0xce   :  { %v531_v61 = vadd.f32 %v530_v60, %v511_v59 }
  0xe2   :  { %v550_v62 = vpop.f32.mrf.mxu0 }
  0xe3   :  { %v551_v63 = vadd.f32 %v550_v62, %v531_v61 }
  0xe5   :  { %v554_v3 = vrot.slane %v551_v63, 1  ;;  %v555_v4 = vperm.slane %v551_v63, 0 }
  0xe7   :  { %v556_v5 = vperm.slane %v554_v3, 0  ;;  %v559_v7 = vadd.f32 %v555_v4, %v230_v45  ;;  %v560_v8 = vadd.f32 %v555_v4, %v233_v46 }
  0xe9   :  { %v561_v2 = vadd.f32 %v556_v5, %v236_v47  ;;  %v562_v9 = vadd.f32 %v556_v5, %v239_v48  ;;  %563 = vst [vmem:[%s1166_s7] sm:$0xff] %v559_v7 }
  0xea   :  { %564 = vst [vmem:[%s1166_s7 + $0x8] sm:$0xff] %v560_v8 }
  0xeb   :  { %565 = vst [vmem:[%s1166_s7 + $0x10] sm:$0xff] %v561_v2 }
  0xec   :  { %566 = vst [vmem:[%s1166_s7 + $0x18] sm:$0xff] %v562_v9 }

</bundles_post_ra>
